<compile_context>
chip_gen: v5e
topology: v5e:2x2
jax: 0.10.0
libtpu: 0.0.40
codegen_flags: <defaults>
</compile_context>

<pallas_src>
import numpy as np
import jax
import jax.numpy as jnp
from jax.experimental import pallas as pl
from jax.experimental.pallas import tpu as pltpu


# ----------------------------------------------------------------------------
# Small helpers
# ----------------------------------------------------------------------------
def _pad_to(n, m):
    return ((n + m - 1) // m) * m


def _sublane_align(dtype):
    # Native TPU tile is (32 // itemsize, 128); keeping all slab row offsets a
    # multiple of this avoids sublane-shifted (copying) loads for packed dtypes.
    return max(8, 32 // jnp.dtype(dtype).itemsize)


# ----------------------------------------------------------------------------
# Weight slab: every layer packed into ONE tile-aligned 2-D array.
#   block k:  rows [r0, r0+align)            -> row r0 = bias (rest zero)
#             rows [r0+align, r0+align+in_pad) -> zero-padded (in, out) weight
#   columns start at 0 (fc_sex head is offset to column 1) and widths are the
#   128-padded logical widths, so every in-kernel slice is statically aligned.
# ----------------------------------------------------------------------------
def _build_weight_slab(params, input_dim, *, has_esc, dtype):
    align = _sublane_align(dtype)
    f_pad = _pad_to(input_dim, 128)

    entries = []  # (name, w(in,out), b(out,), in_pad, col_off)

    def add(name, w, b, in_pad, col_off=0):
        entries.append((name, jnp.asarray(w, jnp.float32),
                        jnp.reshape(jnp.asarray(b, jnp.float32), (-1,)),
                        in_pad, col_off))

    if has_esc:
        prev = input_dim
        for w, b in params["explicit_sex_classifier"]:
            add("esc", w, b, _pad_to(prev, 128))
            prev = w.shape[1]
        w_s, b_s = params["fc_sex"]
        add("fc_sex", w_s, b_s, _pad_to(prev, 128), col_off=1)  # logit -> col 1

    w_g, b_g = params["fc_gender_in"]                      # (1, sex_dcs)
    sex_dcs = w_g.shape[1]
    add("gender", w_g, b_g, align)                         # only row 0 is read

    dense = params["dense_blocks"]
    w1, b1 = dense[0]                                      # (input_dim+sex_dcs, d1)
    d1 = w1.shape[1]
    add("w1a", w1[:input_dim], b1, f_pad)                  # features part (+bias)
    add("w1b", w1[input_dim:], jnp.zeros((d1,), jnp.float32), _pad_to(sex_dcs, 128))
    prev = d1
    for w, b in dense[1:]:
        add("dense_rest", w, b, _pad_to(prev, 128))
        prev = w.shape[1]

    w_a, b_a = params["fc_boneage"]
    if has_esc:
        add("head", w_a, b_a, _pad_to(prev, 128))          # age -> col 0
    else:
        w_s, b_s = params["fc_sex"]
        add("head",
            jnp.concatenate([jnp.asarray(w_a), jnp.asarray(w_s)], axis=1),
            jnp.concatenate([jnp.reshape(jnp.asarray(b_a), (-1,)),
                             jnp.reshape(jnp.asarray(b_s), (-1,))]),
            _pad_to(prev, 128))                            # age col 0, sex col 1

    cols = max(_pad_to(c + w.shape[1], 128) for (_, w, _, _, c) in entries)
    rows = sum(align + ip for (_, _, _, ip, _) in entries)

    slab = jnp.zeros((rows, cols), jnp.float32)
    meta = {"esc": [], "dense_rest": []}
    r = 0
    for name, w, b, in_pad, col_off in entries:
        in_f, out_f = w.shape
        out_pad = _pad_to(col_off + out_f, 128)
        slab = slab.at[r, col_off:col_off + out_f].set(b)
        slab = slab.at[r + align:r + align + in_f, col_off:col_off + out_f].set(w)
        blk = (r, in_pad, out_pad)
        if name in ("esc", "dense_rest"):
            meta[name].append(blk)
        else:
            meta[name] = blk
        r += align + in_pad
    return slab.astype(dtype), meta, align


# ----------------------------------------------------------------------------
# Fused forward kernel (static network structure baked in via `meta`)
# ----------------------------------------------------------------------------
def _make_fused_kernel(meta, *, pass_male, has_esc, compute_dtype, bias_rows):
    f32 = jnp.float32

    def lin(slab_ref, x, blk, relu):
        r0, in_pad, out_pad = blk
        w = slab_ref[r0 + bias_rows: r0 + bias_rows + in_pad, 0:out_pad]
        b = slab_ref[r0: r0 + 1, 0:out_pad].astype(f32)
        y = jnp.dot(x.astype(compute_dtype), w, preferred_element_type=f32) + b
        return jnp.maximum(y, 0.0) if relu else y

    def kernel(*refs):
        if pass_male:
            feat_ref, male_ref, slab_ref, out_ref = refs
        else:
            feat_ref, slab_ref, out_ref = refs

        feats = feat_ref[...]                                    # (Bt, F_PAD)

        sex_full = None
        if has_esc:
            h = feats
            for blk in meta["esc"]:
                h = lin(slab_ref, h, blk, relu=True)             # dropout = identity
            # fc_sex: logit placed in column 1, zero elsewhere.
            sex_full = lin(slab_ref, h, meta["fc_sex"], relu=False)

        if pass_male:
            male_col = male_ref[...].astype(f32)                 # (Bt, 1)
        else:
            # PyTorch: male = sex_hat.detach() (forward-only). sex_full is zero
            # outside column 1, so a lane reduction extracts the logit without
            # an unaligned lane slice.
            male_col = jnp.sum(sex_full, axis=-1, keepdims=True)

        # fc_gender_in (in_features=1): broadcast outer product on the VPU.
        rg, _, og = meta["gender"]
        wg = slab_ref[rg + bias_rows: rg + bias_rows + 1, 0:og].astype(f32)
        bg = slab_ref[rg: rg + 1, 0:og].astype(f32)
        m = jnp.maximum(male_col * wg + bg, 0.0)                 # (Bt, S_PAD) f32

        # Dense block 1: torch.cat([features, m], -1) @ W1 as a split-dot over
        # two host-side pre-split, tile-aligned slab blocks.
        ra, fa, oa = meta["w1a"]
        rb, sb, _ = meta["w1b"]
        x = (jnp.dot(feats,
                     slab_ref[ra + bias_rows: ra + bias_rows + fa, 0:oa],
                     preferred_element_type=f32)
             + jnp.dot(m.astype(compute_dtype),
                       slab_ref[rb + bias_rows: rb + bias_rows + sb, 0:oa],
                       preferred_element_type=f32)
             + slab_ref[ra: ra + 1, 0:oa].astype(f32))
        x = jnp.maximum(x, 0.0)

        for blk in meta["dense_rest"]:
            x = lin(slab_ref, x, blk, relu=True)                 # dropout = identity

        # Heads: fc_boneage in col 0 (+ merged fc_sex in col 1 when no ESC).
        head = lin(slab_ref, x, meta["head"], relu=False)
        out = head + sex_full if has_esc else head
        out_ref[...] = out.astype(out_ref.dtype)

    return kernel


# ----------------------------------------------------------------------------
# Wrapper: one pallas_call for the whole network, gridded over batch.
# ----------------------------------------------------------------------------
def dense_network_forward(params, features, male=None, *, correct_sex=True,
                          compute_dtype=jnp.bfloat16, max_batch_tile=512):
    has_esc = params["explicit_sex_classifier"] is not None
    pass_male = (correct_sex and male is not None) or (not has_esc)
    if pass_male and male is None:
        raise ValueError("`male` is required when there is no explicit sex classifier")

    B, input_dim = features.shape
    f_pad = _pad_to(input_dim, 128)
    out_w = 128  # both 1-wide heads live in one lane-dense (B, 128) output slab

    slab, meta, align = _build_weight_slab(params, input_dim, has_esc=has_esc,
                                           dtype=compute_dtype)

    # Batch grid: "parallel" -> megacore sharding (mandatory to use both TCs on
    # v7x); 512-row tiles are safe on all generations' VMEM budgets.
    max_batch_tile = max(align, (max_batch_tile // align) * align)
    b_tile = min(_pad_to(B, align), max_batch_tile)
    num_tiles = pl.cdiv(B, b_tile)
    b_pad = num_tiles * b_tile

    feats_p = jnp.pad(features.astype(compute_dtype),
                      ((0, b_pad - B), (0, f_pad - input_dim)))
    args = [feats_p]
    in_specs = [pl.BlockSpec((b_tile, f_pad), lambda i: (i, 0))]
    if pass_male:
        male_p = jnp.pad(jnp.asarray(male, jnp.float32).reshape(B, 1),
                         ((0, b_pad - B), (0, 0)))
        args.append(male_p)
        in_specs.append(pl.BlockSpec((b_tile, 1), lambda i: (i, 0)))
    args.append(slab)
    in_specs.append(pl.BlockSpec(slab.shape, lambda i: (0, 0)))  # resident, 1 DMA

    kernel = _make_fused_kernel(meta, pass_male=pass_male, has_esc=has_esc,
                                compute_dtype=compute_dtype, bias_rows=align)

    bpe = jnp.dtype(compute_dtype).itemsize
    est_vmem = (2 * slab.size * bpe
                + 2 * (b_tile * f_pad * bpe + b_tile * 4 + b_tile * out_w * 4)
                + (2 << 20))
    vmem_limit = int(min(max(est_vmem, 32 << 20), 64 << 20))

    out = pl.pallas_call(
        kernel,
        grid=(num_tiles,),
        out_shape=jax.ShapeDtypeStruct((b_pad, out_w), jnp.float32),
        in_specs=in_specs,
        out_specs=pl.BlockSpec((b_tile, out_w), lambda i: (i, 0)),
        compiler_params=pltpu.CompilerParams(
            dimension_semantics=("parallel",),
            vmem_limit_bytes=vmem_limit),
    )(*args)

    return out[:B, 0:1], out[:B, 1:2]


# ----------------------------------------------------------------------------
# Deterministic parameter init (matches nn.Linear default U(-1/sqrt(fan_in),.))
# Weights stored transposed as (in, out) so kernels compute y = x @ W + b.
# ----------------------------------------------------------------------------
def _init_linear(key, in_f, out_f):
    k_w, k_b = jax.random.split(key)
    bound = 1.0 / np.sqrt(in_f)
    w = jax.random.uniform(k_w, (in_f, out_f), jnp.float32, -bound, bound)
    b = jax.random.uniform(k_b, (1, out_f), jnp.float32, -bound, bound)
    return w, b


def init_dense_network(key, input_dim, dense_layers, sex_dcs,
                       explicit_sex_classifier):
    keys = iter(jax.random.split(key, 64))
    params = {}
    params["fc_gender_in"] = _init_linear(next(keys), 1, sex_dcs)

    sizes = [input_dim + sex_dcs] + list(dense_layers)
    params["dense_blocks"] = [
        _init_linear(next(keys), sizes[i], sizes[i + 1])
        for i in range(len(sizes) - 1)
    ]
    params["fc_boneage"] = _init_linear(next(keys), sizes[-1], 1)
    params["fc_sex"] = _init_linear(next(keys), sizes[-1], 1)

    params["explicit_sex_classifier"] = None
    if explicit_sex_classifier:
        esc_sizes = [input_dim] + list(explicit_sex_classifier)
        params["explicit_sex_classifier"] = [
            _init_linear(next(keys), esc_sizes[i], esc_sizes[i + 1])
            for i in range(len(esc_sizes) - 1)
        ]
        params["fc_sex"] = _init_linear(next(keys), esc_sizes[-1], 1)
    return params


# ----------------------------------------------------------------------------
# Pure-JAX reference (mirrors the kernel's compute-dtype rounding so the check
# is tight: products are exact bf16*bf16 accumulated in f32 in both paths).
# ----------------------------------------------------------------------------
def _reference_forward(params, features, male, *, correct_sex=True,
                       compute_dtype=jnp.float32):
    cdt = compute_dtype

    def rnd(v):
        return jnp.asarray(v, jnp.float32).astype(cdt).astype(jnp.float32)

    def lin(x, w, b, relu):
        y = jnp.dot(x.astype(cdt), jnp.asarray(w).astype(cdt),
                    preferred_element_type=jnp.float32)
        y = y + rnd(jnp.reshape(jnp.asarray(b), (1, -1)))
        return jnp.maximum(y, 0.0) if relu else y

    sex_hat = None
    if params["explicit_sex_classifier"] is not None:
        h = features
        for w, b in params["explicit_sex_classifier"]:
            h = lin(h, w, b, True)
        sex_hat = lin(h, *params["fc_sex"], relu=False)
        if not (correct_sex and male is not None):
            male = jax.lax.stop_gradient(sex_hat)

    w_g, b_g = params["fc_gender_in"]
    male_col = jnp.asarray(male, jnp.float32).reshape(-1, 1)
    m = jnp.maximum(male_col * rnd(w_g).reshape(1, -1)
                    + rnd(b_g).reshape(1, -1), 0.0)

    x = jnp.concatenate([features, m], axis=-1)
    for w, b in params["dense_blocks"]:
        x = lin(x, w, b, True)
    age_hat = lin(x, *params["fc_boneage"], relu=False)
    if params["explicit_sex_classifier"] is None:
        sex_hat = lin(x, *params["fc_sex"], relu=False)
    return age_hat, sex_hat


if __name__ == "__main__":
    key = jax.random.PRNGKey(0)
    tol = dict(rtol=1e-3, atol=1e-3)

    # --- Config 1: explicit sex classifier, given male, tiny batch ----------
    batch, input_dim = 4, 32
    dense_layers, sex_dcs, esc_layers = [32, 16], 16, [16]
    k_param, k_feat, k_male, k2 = jax.random.split(key, 4)
    params = init_dense_network(k_param, input_dim, dense_layers, sex_dcs, esc_layers)
    features = jax.random.normal(k_feat, (batch, input_dim), jnp.float32)
    male = (jax.random.uniform(k_male, (batch, 1)) > 0.5).astype(jnp.float32)

    age, sex = dense_network_forward(params, features, male, correct_sex=True)
    jax.block_until_ready((age, sex))
    r_age, r_sex = _reference_forward(params, features, male, correct_sex=True,
                                      compute_dtype=jnp.bfloat16)
    np.testing.assert_allclose(np.asarray(age), np.asarray(r_age), **tol)
    np.testing.assert_allclose(np.asarray(sex), np.asarray(r_sex), **tol)
    assert age.shape == (batch, 1) and sex.shape == (batch, 1)

    # --- Config 1b: detached-sex path (male = sex_hat.detach(), forward) ----
    age, sex = dense_network_forward(params, features, None, correct_sex=False)
    jax.block_until_ready((age, sex))
    r_age, r_sex = _reference_forward(params, features, None, correct_sex=False,
                                      compute_dtype=jnp.bfloat16)
    np.testing.assert_allclose(np.asarray(age), np.asarray(r_age), **tol)
    np.testing.assert_allclose(np.asarray(sex), np.asarray(r_sex), **tol)

    # --- Config 2: no explicit sex classifier (merged heads), gridded batch -
    batch2 = 600
    k_p2, k_f2, k_m2 = jax.random.split(k2, 3)
    params2 = init_dense_network(k_p2, input_dim, [64, 32], sex_dcs, None)
    features2 = jax.random.normal(k_f2, (batch2, input_dim), jnp.float32)
    male2 = (jax.random.uniform(k_m2, (batch2, 1)) > 0.5).astype(jnp.float32)

    age2, sex2 = dense_network_forward(params2, features2, male2, correct_sex=True)
    jax.block_until_ready((age2, sex2))
    r_age2, r_sex2 = _reference_forward(params2, features2, male2, correct_sex=True,
                                        compute_dtype=jnp.bfloat16)
    np.testing.assert_allclose(np.asarray(age2), np.asarray(r_age2), **tol)
    np.testing.assert_allclose(np.asarray(sex2), np.asarray(r_sex2), **tol)
    assert age2.shape == (batch2, 1) and sex2.shape == (batch2, 1)

    print("KERNEL_OK")
</pallas_src>

<mosaic_0001>
module attributes {stable_mosaic.version = 11 : i64} {
  func.func @kernel(%arg0: i32, %arg1: memref<16x128xbf16, #tpu.memory_space<vmem>>, %arg2: memref<16x1xf32, #tpu.memory_space<vmem>>, %arg3: memref<896x128xbf16, #tpu.memory_space<vmem>>, %arg4: memref<16x128xf32, #tpu.memory_space<vmem>>) attributes {dimension_semantics = [#tpu.dimension_semantics<parallel>], iteration_bounds = array<i64: 1>, scalar_prefetch = 0 : i64, scratch_operands = 0 : i64, tpu.core_type = #tpu.core_type<tc>, window_params = [{transform_indices = @transform_0, window_bounds = array<i64: 16, 128>}, {transform_indices = @transform_1, window_bounds = array<i64: 16, 1>}, {pipeline_mode = #tpu.pipeline_mode<synchronous>, transform_indices = @transform_2, window_bounds = array<i64: 896, 128>}, {transform_indices = @transform_3, window_bounds = array<i64: 16, 128>}]} {
    %c0 = arith.constant 0 : index
    %c0_0 = arith.constant 0 : index
    %0 = vector.load %arg1[%c0, %c0_0] : memref<16x128xbf16, #tpu.memory_space<vmem>>, vector<16x128xbf16>
    %c16 = arith.constant 16 : index
    %c0_1 = arith.constant 0 : index
    %1 = vector.load %arg3[%c16, %c0_1] : memref<896x128xbf16, #tpu.memory_space<vmem>>, vector<128x128xbf16>
    %c0_2 = arith.constant 0 : index
    %c0_3 = arith.constant 0 : index
    %2 = vector.load %arg3[%c0_2, %c0_3] : memref<896x128xbf16, #tpu.memory_space<vmem>>, vector<1x128xbf16>
    %3 = arith.extf %2 : vector<1x128xbf16> to vector<1x128xf32>
    %cst = arith.constant dense<0.000000e+00> : vector<16x128xf32>
    %4 = tpu.matmul %0, %1, %cst {dimension_numbers = #tpu.dot_dimension_numbers<[1], [0], [0], [1], [0, 0, 1, 1], [], []>} : vector<16x128xbf16>, vector<128x128xbf16>, vector<16x128xf32> -> vector<16x128xf32>
    %5 = vector.broadcast %3 : vector<1x128xf32> to vector<16x128xf32>
    %6 = arith.addf %4, %5 : vector<16x128xf32>
    %cst_4 = arith.constant 0.000000e+00 : f32
    %7 = vector.broadcast %cst_4 : f32 to vector<16x128xf32>
    %8 = arith.maximumf %6, %7 : vector<16x128xf32>
    %c160 = arith.constant 160 : index
    %c0_5 = arith.constant 0 : index
    %9 = vector.load %arg3[%c160, %c0_5] : memref<896x128xbf16, #tpu.memory_space<vmem>>, vector<128x128xbf16>
    %c144 = arith.constant 144 : index
    %c0_6 = arith.constant 0 : index
    %10 = vector.load %arg3[%c144, %c0_6] : memref<896x128xbf16, #tpu.memory_space<vmem>>, vector<1x128xbf16>
    %11 = arith.extf %10 : vector<1x128xbf16> to vector<1x128xf32>
    %12 = arith.truncf %8 : vector<16x128xf32> to vector<16x128xbf16>
    %cst_7 = arith.constant dense<0.000000e+00> : vector<16x128xf32>
    %13 = tpu.matmul %12, %9, %cst_7 {dimension_numbers = #tpu.dot_dimension_numbers<[1], [0], [0], [1], [0, 0, 1, 1], [], []>} : vector<16x128xbf16>, vector<128x128xbf16>, vector<16x128xf32> -> vector<16x128xf32>
    %14 = vector.broadcast %11 : vector<1x128xf32> to vector<16x128xf32>
    %15 = arith.addf %13, %14 : vector<16x128xf32>
    %c0_8 = arith.constant 0 : index
    %c0_9 = arith.constant 0 : index
    %16 = vector.load %arg2[%c0_8, %c0_9] : memref<16x1xf32, #tpu.memory_space<vmem>>, vector<16x1xf32>
    %c304 = arith.constant 304 : index
    %c0_10 = arith.constant 0 : index
    %17 = vector.load %arg3[%c304, %c0_10] : memref<896x128xbf16, #tpu.memory_space<vmem>>, vector<1x128xbf16>
    %18 = arith.extf %17 : vector<1x128xbf16> to vector<1x128xf32>
    %c288 = arith.constant 288 : index
    %c0_11 = arith.constant 0 : index
    %19 = vector.load %arg3[%c288, %c0_11] : memref<896x128xbf16, #tpu.memory_space<vmem>>, vector<1x128xbf16>
    %20 = arith.extf %19 : vector<1x128xbf16> to vector<1x128xf32>
    %21 = vector.broadcast %16 : vector<16x1xf32> to vector<16x128xf32>
    %22 = vector.broadcast %18 : vector<1x128xf32> to vector<16x128xf32>
    %23 = arith.mulf %21, %22 : vector<16x128xf32>
    %24 = vector.broadcast %20 : vector<1x128xf32> to vector<16x128xf32>
    %25 = arith.addf %23, %24 : vector<16x128xf32>
    %cst_12 = arith.constant 0.000000e+00 : f32
    %26 = vector.broadcast %cst_12 : f32 to vector<16x128xf32>
    %27 = arith.maximumf %25, %26 : vector<16x128xf32>
    %c336 = arith.constant 336 : index
    %c0_13 = arith.constant 0 : index
    %28 = vector.load %arg3[%c336, %c0_13] : memref<896x128xbf16, #tpu.memory_space<vmem>>, vector<128x128xbf16>
    %cst_14 = arith.constant dense<0.000000e+00> : vector<16x128xf32>
    %29 = tpu.matmul %0, %28, %cst_14 {dimension_numbers = #tpu.dot_dimension_numbers<[1], [0], [0], [1], [0, 0, 1, 1], [], []>} : vector<16x128xbf16>, vector<128x128xbf16>, vector<16x128xf32> -> vector<16x128xf32>
    %30 = arith.truncf %27 : vector<16x128xf32> to vector<16x128xbf16>
    %c480 = arith.constant 480 : index
    %c0_15 = arith.constant 0 : index
    %31 = vector.load %arg3[%c480, %c0_15] : memref<896x128xbf16, #tpu.memory_space<vmem>>, vector<128x128xbf16>
    %cst_16 = arith.constant dense<0.000000e+00> : vector<16x128xf32>
    %32 = tpu.matmul %30, %31, %cst_16 {dimension_numbers = #tpu.dot_dimension_numbers<[1], [0], [0], [1], [0, 0, 1, 1], [], []>} : vector<16x128xbf16>, vector<128x128xbf16>, vector<16x128xf32> -> vector<16x128xf32>
    %33 = arith.addf %29, %32 : vector<16x128xf32>
    %c320 = arith.constant 320 : index
    %c0_17 = arith.constant 0 : index
    %34 = vector.load %arg3[%c320, %c0_17] : memref<896x128xbf16, #tpu.memory_space<vmem>>, vector<1x128xbf16>
    %35 = arith.extf %34 : vector<1x128xbf16> to vector<1x128xf32>
    %36 = vector.broadcast %35 : vector<1x128xf32> to vector<16x128xf32>
    %37 = arith.addf %33, %36 : vector<16x128xf32>
    %cst_18 = arith.constant 0.000000e+00 : f32
    %38 = vector.broadcast %cst_18 : f32 to vector<16x128xf32>
    %39 = arith.maximumf %37, %38 : vector<16x128xf32>
    %c624 = arith.constant 624 : index
    %c0_19 = arith.constant 0 : index
    %40 = vector.load %arg3[%c624, %c0_19] : memref<896x128xbf16, #tpu.memory_space<vmem>>, vector<128x128xbf16>
    %c608 = arith.constant 608 : index
    %c0_20 = arith.constant 0 : index
    %41 = vector.load %arg3[%c608, %c0_20] : memref<896x128xbf16, #tpu.memory_space<vmem>>, vector<1x128xbf16>
    %42 = arith.extf %41 : vector<1x128xbf16> to vector<1x128xf32>
    %43 = arith.truncf %39 : vector<16x128xf32> to vector<16x128xbf16>
    %cst_21 = arith.constant dense<0.000000e+00> : vector<16x128xf32>
    %44 = tpu.matmul %43, %40, %cst_21 {dimension_numbers = #tpu.dot_dimension_numbers<[1], [0], [0], [1], [0, 0, 1, 1], [], []>} : vector<16x128xbf16>, vector<128x128xbf16>, vector<16x128xf32> -> vector<16x128xf32>
    %45 = vector.broadcast %42 : vector<1x128xf32> to vector<16x128xf32>
    %46 = arith.addf %44, %45 : vector<16x128xf32>
    %cst_22 = arith.constant 0.000000e+00 : f32
    %47 = vector.broadcast %cst_22 : f32 to vector<16x128xf32>
    %48 = arith.maximumf %46, %47 : vector<16x128xf32>
    %c768 = arith.constant 768 : index
    %c0_23 = arith.constant 0 : index
    %49 = vector.load %arg3[%c768, %c0_23] : memref<896x128xbf16, #tpu.memory_space<vmem>>, vector<128x128xbf16>
    %c752 = arith.constant 752 : index
    %c0_24 = arith.constant 0 : index
    %50 = vector.load %arg3[%c752, %c0_24] : memref<896x128xbf16, #tpu.memory_space<vmem>>, vector<1x128xbf16>
    %51 = arith.extf %50 : vector<1x128xbf16> to vector<1x128xf32>
    %52 = arith.truncf %48 : vector<16x128xf32> to vector<16x128xbf16>
    %cst_25 = arith.constant dense<0.000000e+00> : vector<16x128xf32>
    %53 = tpu.matmul %52, %49, %cst_25 {dimension_numbers = #tpu.dot_dimension_numbers<[1], [0], [0], [1], [0, 0, 1, 1], [], []>} : vector<16x128xbf16>, vector<128x128xbf16>, vector<16x128xf32> -> vector<16x128xf32>
    %54 = vector.broadcast %51 : vector<1x128xf32> to vector<16x128xf32>
    %55 = arith.addf %53, %54 : vector<16x128xf32>
    %56 = arith.addf %55, %15 : vector<16x128xf32>
    %c0_26 = arith.constant 0 : index
    %c0_27 = arith.constant 0 : index
    %57 = vector.load %arg4[%c0_26, %c0_27] : memref<16x128xf32, #tpu.memory_space<vmem>>, vector<16x128xf32>
    tpu.vector_store %arg4[%c0_26, %c0_27], %56 {strides = array<i32>} : memref<16x128xf32, #tpu.memory_space<vmem>>, vector<16x128xf32>,
    return
  }
  func.func @transform_0(%arg0: i32) -> (i32, i32) {
    %c0_i32 = arith.constant 0 : i32
    %c0_i32_0 = arith.constant 0 : i32
    return %arg0, %c0_i32 : i32, i32
  }
  func.func @transform_1(%arg0: i32) -> (i32, i32) {
    %c0_i32 = arith.constant 0 : i32
    %c0_i32_0 = arith.constant 0 : i32
    return %arg0, %c0_i32 : i32, i32
  }
  func.func @transform_2(%arg0: i32) -> (i32, i32) {
    %c0_i32 = arith.constant 0 : i32
    %c0_i32_0 = arith.constant 0 : i32
    %c0_i32_1 = arith.constant 0 : i32
    return %c0_i32, %c0_i32_0 : i32, i32
  }
  func.func @transform_3(%arg0: i32) -> (i32, i32) {
    %c0_i32 = arith.constant 0 : i32
    %c0_i32_0 = arith.constant 0 : i32
    return %arg0, %c0_i32 : i32, i32
  }
}

</mosaic_0001>

<bundles_post_ra>
// kernel: tpu_custom_call.1
= control target key start
LH: loop header
LB: loop body
LE: loop exit
PB: predicated region body
PF: predicated region fallthrough
CT: control target
= control target key end

     0   :  { %8 = vsyncpa [#allocation3], 0  ;;  %s928_s0 = inlined_call_operand.vmem [shape: bf16[16,128], index: 0, kind: input, shape index: {}]   ;;  %s929_s1 = inlined_call_operand.vmem [shape: f32[16,1], index: 1, kind: input, shape index: {}]   ;;  %s930_s2 = inlined_call_operand.hbm [shape: bf16[896,128], index: 2, kind: input, shape index: {}]   ;;  %s931_s3 = inlined_call_operand.hbm [shape: f32[16,128], index: 3, kind: output, shape index: {}]  }
   0x1   :  { %9 = vsyncpa [#allocation4], 0  ;;  %s18_s14 = sshll.u32 %s930_s2, 4  ;;  %s886_s15 = smov [#allocation2]   ;;  %s19_s14 = int_to_ptr.hbm [resolvable:$true] %s18_s14 }
   0x2   :  { %s20_s16 = sshll.u32 %s886_s15, 4  ;;  %s887_s17 = smov 64   ;;  %s21_s16 = int_to_ptr.vmem [resolvable:$true] %s20_s16 }
   0x3   :  { %s888_s18 = smov 4  }
   0x4   :  { %26 = dma.hbm_to_vmem [thread:$0]  %s19_s14, 7168, %s21_s16, [#allocation3], %s887_s17, %s887_s17, %s888_s18  }
   0x5   :  { %882 = dma.done.wait [#allocation3], 7168  }
   0x6   :  { %883 = vsyncadd [#allocation3], 4294960128  ;;  %v889_v0 = vmov 0   ;;  %v204_v1 = vld [vmem:[%s929_s1] sm:$0xff]  ;;  %v809_v3 = vld [vmem:[#allocation2 + $0x128] sm:$0xff]  ;;  %s568_s26 = sshll.u32 %s931_s3, 4  ;;  %s569_s26 = int_to_ptr.hbm [resolvable:$true] %s568_s26 }
   0x7   :  { %833 = vset.pattern.permute.xlu0 %v889_v0  ;;  %v801_v2 = vld [vmem:[#allocation2 + $0xe0] sm:$0xff]  ;;  %v800_v4 = vld [vmem:[#allocation2 + $0xd8] sm:$0xff]  ;;  %309 = vmatpush.bf16.msra.mxu2 %v809_v3  ;;  %v205_v6 = vld [vmem:[%s929_s1 + $0x8] sm:$0xff]  ;;  %s891_s27 = smov 128   ;;  %s892_s28 = smov 8  }
   0x8   :  { %212 = vperm.xlu0 %833, %v204_v1   ;;  %371 = vmatpush.bf16.msra.mxu3 %v801_v2  ;;  %v808_v5 = vld [vmem:[#allocation2 + $0x120] sm:$0xff]  ;;  %v799_v7 = vld [vmem:[#allocation2 + $0xd0] sm:$0xff]  ;;  %v807_v8 = vld [vmem:[#allocation2 + $0x118] sm:$0xff] }
   0x9   :  { %v798_v9 = vld [vmem:[#allocation2 + $0xc8] sm:$0xff]  ;;  %v806_v10 = vld [vmem:[#allocation2 + $0x110] sm:$0xff]  ;;  %v797_v11 = vld [vmem:[#allocation2 + $0xc0] sm:$0xff] }
   0xa   :  { %v796_v12 = vld [vmem:[#allocation2 + $0xb8] sm:$0xff]  ;;  %v805_v13 = vld [vmem:[#allocation2 + $0x108] sm:$0xff]  ;;  %v795_v14 = vld [vmem:[#allocation2 + $0xb0] sm:$0xff] }
   0xb   :  { %310 = vmatpush.bf16.msra.mxu2 %v808_v5  ;;  %v804_v15 = vld [vmem:[#allocation2 + $0x100] sm:$0xff]  ;;  %v794_v16 = vld [vmem:[#allocation2 + $0xa8] sm:$0xff]  ;;  %v803_v18 = vld [vmem:[#allocation2 + $0xf8] sm:$0xff] }
   0xc   :  { %372 = vmatpush.bf16.msra.mxu3 %v800_v4  ;;  %v777_v17 = vld [vmem:[%s928_s0] sm:$0xff]  ;;  %v802_v19 = vld [vmem:[#allocation2 + $0xf0] sm:$0xff]  ;;  %v784_v21 = vld [vmem:[#allocation2 + $0x38] sm:$0xff]  ;;  %s890_s0 = smov [#allocation5]  }
   0xd   :  { %v785_v20 = vld [vmem:[#allocation2 + $0x40] sm:$0xff]  ;;  %v783_v22 = vld [vmem:[#allocation2 + $0x30] sm:$0xff]  ;;  %v206_v23 = vld [vmem:[#allocation2 + $0x98] sm:$0x1]  ;;  %s566_s23 = sshll.u32 %s890_s0, 4  ;;  %s567_s23 = int_to_ptr.vmem [resolvable:$true] %s566_s23 }
   0xe   :  { %106 = vmatpush.bf16.msra.mxu0 %v785_v20  ;;  %v782_v24 = vld [vmem:[#allocation2 + $0x28] sm:$0xff]  ;;  %v207_v25 = vunpack.c.l.bf16 %v206_v23  ;;  %v208_v26 = vld [vmem:[#allocation2 + $0x90] sm:$0x1]  ;;  %v781_v27 = vld [vmem:[#allocation2 + $0x20] sm:$0xff] }
   0xf   :  { %311 = vmatpush.bf16.msra.mxu2 %v807_v8  ;;  %v209_v29 = vunpack.c.l.bf16 %v208_v26  ;;  %v780_v31 = vld [vmem:[#allocation2 + $0x18] sm:$0xff]  ;;  %v779_v34 = vld [vmem:[#allocation2 + $0x10] sm:$0xff]  ;;  %v778_v39 = vld [vmem:[#allocation2 + $0x8] sm:$0xff] }
  0x10   :  { %217 = vperm.xlu0 %833, %v205_v6   ;;  %373 = vmatpush.bf16.msra.mxu3 %v799_v7  ;;  %v220_v30 = vperm.slane %v207_v25, 0  ;;  %v817_v40 = vld [vmem:[#allocation2 + $0x170] sm:$0xff]  ;;  %v816_v44 = vld [vmem:[#allocation2 + $0x168] sm:$0xff]  ;;  %v815_v45 = vld [vmem:[#allocation2 + $0x160] sm:$0xff] }
  0x11   :  { %v223_v32 = vperm.slane %v209_v29, 0  ;;  %v814_v46 = vld [vmem:[#allocation2 + $0x158] sm:$0xff]  ;;  %v813_v47 = vld [vmem:[#allocation2 + $0x150] sm:$0xff]  ;;  %v812_v48 = vld [vmem:[#allocation2 + $0x148] sm:$0xff] }
  0x12   :  { %107 = vmatpush.bf16.msra.mxu0 %v784_v21  ;;  %v811_v49 = vld [vmem:[#allocation2 + $0x140] sm:$0xff]  ;;  %v810_v50 = vld [vmem:[#allocation2 + $0x138] sm:$0xff]  ;;  %v793_v51 = vld [vmem:[#allocation2 + $0x88] sm:$0xff] }
  0x13   :  { %312 = vmatpush.bf16.msra.mxu2 %v806_v10  ;;  %190 = vmatpush.bf16.msra.mxu1 %v793_v51  ;;  %v792_v52 = vld [vmem:[#allocation2 + $0x80] sm:$0xff]  ;;  %v791_v53 = vld [vmem:[#allocation2 + $0x78] sm:$0xff]  ;;  %v790_v54 = vld [vmem:[#allocation2 + $0x70] sm:$0xff] }
  0x14   :  { %374 = vmatpush.bf16.msra.mxu3 %v798_v9  ;;  %v49_v55 = vld [vmem:[#allocation2] sm:$0x1]  ;;  %v789_v60 = vld [vmem:[#allocation2 + $0x68] sm:$0xff]  ;;  %v787_v6 = vld [vmem:[#allocation2 + $0x58] sm:$0xff] }
  0x15   :  { %v385_v58 = vld [vmem:[#allocation2 + $0xa0] sm:$0x1]  ;;  %v50_v59 = vunpack.c.l.bf16 %v49_v55  ;;  %v824_v20 = vld [vmem:[#allocation2 + $0x1b0] sm:$0xff]  ;;  %v823_v21 = vld [vmem:[#allocation2 + $0x1a8] sm:$0xff] }
  0x16   :  { %108 = vmatpush.bf16.msra.mxu0 %v783_v22  ;;  %v386_v62 = vunpack.c.l.bf16 %v385_v58  ;;  %v788_v0 = vld [vmem:[#allocation2 + $0x60] sm:$0xff]  ;;  %v821_v23 = vld [vmem:[#allocation2 + $0x198] sm:$0xff]  ;;  %v819_v25 = vld [vmem:[#allocation2 + $0x188] sm:$0xff] }
  0x17   :  { %313 = vmatpush.bf16.msra.mxu2 %v805_v13  ;;  %191 = vmatpush.bf16.msra.mxu1 %v792_v52  ;;  %v51_v63 = vperm.slane %v50_v59, 0  ;;  %v822_v22 = vld [vmem:[#allocation2 + $0x1a0] sm:$0xff] }
  0x18   :  { %375 = vmatpush.bf16.msra.mxu3 %v797_v11  ;;  %v387_v3 = vperm.slane %v386_v62, 0  ;;  %v818_v26 = vld [vmem:[#allocation2 + $0x180] sm:$0xff] }
  0x1a   :  { %109 = vmatpush.bf16.msra.mxu0 %v782_v24  ;;  %v820_v24 = vld [vmem:[#allocation2 + $0x190] sm:$0xff] }
  0x1b   :  { %314 = vmatpush.bf16.msra.mxu2 %v804_v15  ;;  %192 = vmatpush.bf16.msra.mxu1 %v791_v53  ;;  %v825_v15 = vld [vmem:[#allocation2 + $0x1b8] sm:$0xff] }
  0x1c   :  { %376 = vmatpush.bf16.msra.mxu3 %v796_v12 }
  0x1e   :  { %110 = vmatpush.bf16.msra.mxu0 %v781_v27  ;;  %v408_v27 = vld [vmem:[#allocation2 + $0x130] sm:$0x1] }
  0x1f   :  { %315 = vmatpush.bf16.msra.mxu2 %v803_v18  ;;  %193 = vmatpush.bf16.msra.mxu1 %v790_v54 }
  0x20   :  { %377 = vmatpush.bf16.msra.mxu3 %v795_v14  ;;  %v786_v14 = vld [vmem:[#allocation2 + $0x50] sm:$0xff] }
  0x22   :  { %111 = vmatpush.bf16.msra.mxu0 %v780_v31 }
  0x23   :  { %316 = vmatpush.bf16.msra.mxu2 %v802_v19  ;;  %194 = vmatpush.bf16.msra.mxu1 %v789_v60 }
  0x24   :  { %378 = vmatpush.bf16.msra.mxu3 %v794_v16 }
  0x26   :  { %112 = vmatpush.bf16.msra.mxu0 %v779_v34 }
  0x27   :  { %379 = vmatmul.bf16.vlgmr.msra.gmra.mxu3 %v777_v17  ;;  %195 = vmatpush.bf16.msra.mxu1 %v788_v0 }
  0x2a   :  { %113 = vmatpush.bf16.msra.mxu0 %v778_v39  ;;  %v492_v39 = vld [vmem:[#allocation2 + $0x178] sm:$0x1] }
  0x2b   :  { %196 = vmatpush.bf16.msra.mxu1 %v787_v6 }
  0x2d   :  { %114 = vmatmul.bf16.vlgmr.msra.gmra.mxu0 %v777_v17 }
  0x2e   :  { %460 = vmatpush.bf16.msrb.mxu0 %v817_v40 }
  0x2f   :  { %197 = vmatpush.bf16.msra.mxu1 %v786_v14 }
  0x32   :  { %461 = vmatpush.bf16.msrb.mxu0 %v816_v44 }
  0x33   :  { %544 = vmatpush.bf16.msrb.mxu1 %v825_v15 }
  0x36   :  { %462 = vmatpush.bf16.msrb.mxu0 %v815_v45 }
  0x37   :  { %545 = vmatpush.bf16.msrb.mxu1 %v824_v20 }
  0x3a   :  { %463 = vmatpush.bf16.msrb.mxu0 %v814_v46 }
  0x3b   :  { %546 = vmatpush.bf16.msrb.mxu1 %v823_v21 }
  0x3e   :  { %464 = vmatpush.bf16.msrb.mxu0 %v813_v47 }
  0x3f   :  { %547 = vmatpush.bf16.msrb.mxu1 %v822_v22 }
  0x42   :  { %465 = vmatpush.bf16.msrb.mxu0 %v812_v48 }
  0x43   :  { %548 = vmatpush.bf16.msrb.mxu1 %v821_v23 }
  0x46   :  { %466 = vmatpush.bf16.msrb.mxu0 %v811_v49 }
  0x47   :  { %549 = vmatpush.bf16.msrb.mxu1 %v820_v24 }
  0x4a   :  { %467 = vmatpush.bf16.msrb.mxu0 %v810_v50 }
  0x4b   :  { %550 = vmatpush.bf16.msrb.mxu1 %v819_v25 }
  0x4f   :  { %551 = vmatpush.bf16.msrb.mxu1 %v818_v26 }
  0x7a   :  { %v213_v28 = vpop.permute.xlu0 %212 }
  0x7b   :  { %v221_v33 = vmul.f32 %v220_v30, %v213_v28  ;;  %v409_v28 = vunpack.c.l.bf16 %v408_v27 }
  0x7d   :  { %v224_v36 = vadd.f32 %v223_v32, %v221_v33 }
  0x7f   :  { %v226_v41 = vmax.f32 %v224_v36, 0.0 }
  0x82   :  { %v218_v35 = vpop.permute.xlu0 %217 }
  0x83   :  { %v222_v37 = vmul.f32 %v220_v30, %v218_v35  ;;  %v411_v30 = vperm.slane %v409_v28, 0 }
  0x85   :  { %v225_v38 = vadd.f32 %v223_v32, %v222_v37 }
  0x87   :  { %v227_v42 = vmax.f32 %v225_v38, 0.0  ;;  %v138_v38 = vld [vmem:[#allocation2 + $0x48] sm:$0x1] }
  0x89   :  { %v244_v43 = vpack.c.bf16 %v227_v42, %v226_v41  ;;  %v139_v41 = vunpack.c.l.bf16 %v138_v38  ;;  %v493_v42 = vunpack.c.l.bf16 %v492_v39 }
  0x8b   :  { %317 = vmatmul.bf16.vlgmr.msra.gmra.mxu2 %v244_v43  ;;  %v141_v43 = vperm.slane %v139_v41, 0  ;;  %v495_v44 = vperm.slane %v493_v42, 0 }
  0xaa   :  { %v115_v56 = vpop.f32.mrf.mxu0  ;;  %v380_v57 = vpop.f32.mrf.mxu3 }
  0xab   :  { %v116_v4 = vadd.f32 %v115_v56, %v51_v63 }
  0xad   :  { %v120_v11 = vmax.f32 %v116_v4, 0.0 }
  0xb2   :  { %v117_v1 = vpop.f32.mrf.mxu0  ;;  %v382_v7 = vpop.f32.mrf.mxu3 }
  0xb3   :  { %v118_v5 = vadd.f32 %v117_v1, %v51_v63 }
  0xb5   :  { %v121_v12 = vmax.f32 %v118_v5, 0.0 }
  0xb7   :  { %v140_v18 = vpack.c.bf16 %v121_v12, %v120_v11 }
  0xb9   :  { %198 = vmatmul.bf16.vlgmr.msra.gmra.mxu1 %v140_v18 }
 0x10e   :  { %v318_v61 = vpop.f32.mrf.mxu2 }
 0x10f   :  { %v381_v2 = vadd.f32 %v380_v57, %v318_v61 }
 0x111   :  { %v388_v9 = vadd.f32 %v387_v3, %v381_v2 }
 0x113   :  { %v390_v16 = vmax.f32 %v388_v9, 0.0 }
 0x116   :  { %v320_v8 = vpop.f32.mrf.mxu2 }
 0x117   :  { %v383_v10 = vadd.f32 %v382_v7, %v320_v8 }
 0x119   :  { %v389_v13 = vadd.f32 %v387_v3, %v383_v10 }
 0x11b   :  { %v391_v17 = vmax.f32 %v389_v13, 0.0 }
 0x11d   :  { %v410_v19 = vpack.c.bf16 %v391_v17, %v390_v16 }
 0x11f   :  { %468 = vmatmul.bf16.vlgmr.msrb.gmra.mxu0 %v410_v19 }
 0x136   :  { %v199_v37 = vpop.f32.mrf.mxu1 }
 0x137   :  { %v200_v46 = vadd.f32 %v199_v37, %v141_v43 }
 0x13e   :  { %v201_v40 = vpop.f32.mrf.mxu1 }
 0x13f   :  { %v202_v50 = vadd.f32 %v201_v40, %v141_v43 }
 0x19c   :  { %v469_v29 = vpop.f32.mrf.mxu0 }
 0x19d   :  { %v470_v31 = vadd.f32 %v469_v29, %v411_v30 }
 0x19f   :  { %v474_v34 = vmax.f32 %v470_v31, 0.0 }
 0x1a4   :  { %v471_v32 = vpop.f32.mrf.mxu0 }
 0x1a5   :  { %v472_v33 = vadd.f32 %v471_v32, %v411_v30 }
 0x1a7   :  { %v475_v35 = vmax.f32 %v472_v33, 0.0 }
 0x1a9   :  { %v494_v36 = vpack.c.bf16 %v475_v35, %v474_v34 }
 0x1ab   :  { %552 = vmatmul.bf16.vlgmr.msrb.gmra.mxu1 %v494_v36 }
 0x228   :  { %v553_v45 = vpop.f32.mrf.mxu1 }
 0x229   :  { %v554_v47 = vadd.f32 %v553_v45, %v495_v44 }
 0x22b   :  { %v558_v48 = vadd.f32 %v554_v47, %v200_v46 }
 0x22d   :  { %560 = vst [vmem:[#allocation5] sm:$0xff] %v558_v48 }
 0x230   :  { %v555_v49 = vpop.f32.mrf.mxu1 }
 0x231   :  { %v556_v51 = vadd.f32 %v555_v49, %v495_v44 }
 0x233   :  { %v559_v52 = vadd.f32 %v556_v51, %v202_v50 }
 0x235   :  { %561 = vst [vmem:[#allocation5 + $0x8] sm:$0xff] %v559_v52 }
 0x236   :  { %574 = dma.vmem_to_hbm [thread:$0]  %s567_s23, 256, %s569_s26, [#allocation4], %s891_s27, %s891_s27, %s892_s28  }
 0x237   :  { %884 = dma.done.wait [#allocation4], 256  }
 0x238   :  { %885 = vsyncadd [#allocation4], 4294967040 }
 0x239   :  { %579 = vsyncpa [#allocation3], 1 }
 0x23a   :  { %580 = vsyncpa [#allocation4], 1 }

</bundles_post_ra>
